<compile_context>
chip_gen: v6e
topology: v6e:2x2x1
jax: 0.10.0
libtpu: 0.0.40
codegen_flags: <defaults>
</compile_context>

<pallas_src>
import functools
import math

import jax
import jax.numpy as jnp
from jax.experimental import pallas as pl
from jax.experimental.pallas import tpu as pltpu


def _round_up(x, m):
    return (x + m - 1) // m * m


# ---------------------------------------------------------------------------
# Generation-aware sizing.
# ---------------------------------------------------------------------------
def _chip_caps():
    """Returns (per-buffer tile budget bytes, cap for vmem_limit_bytes)."""
    budget = 3 << 20           # unknown generation: middle-of-the-road
    vmem_cap = 48 << 20        # safe under every generation's physical VMEM (v7x: 64 MiB)
    kind = ""
    try:
        kind = jax.devices()[0].device_kind.lower()
    except Exception:
        pass
    try:
        info = pltpu.get_tpu_info()
        phys = int(getattr(info, "vmem_capacity_bytes", 0) or 0)
        if phys:
            # leave ~25% headroom for Mosaic internal scratch; never ask for >96 MiB
            vmem_cap = min(max(phys - phys // 4, 16 << 20), 96 << 20)
    except Exception:
        pass
    if "v5" in kind:
        budget = 2 << 20       # ~820 GB/s HBM: 2 MiB tiles already amortize 0.35us/step
    elif "v6" in kind or "v7" in kind:
        budget = 5 << 20       # faster HBM: bigger tiles matter; vmem_cap keeps v7x safe
    return budget, vmem_cap


def _vmem_limit(tile_f32_bytes, vmem_cap, extra=0):
    # ~2x double-buffered input + 2x output + ~3 f32 temporaries + headroom.
    est = 7 * tile_f32_bytes + extra + (2 << 20)
    return int(min(max(est, 16 << 20), vmem_cap))


# ---------------------------------------------------------------------------
# channels_first kernel: x tile (1, C, TL); normalize over C (sublane axis),
# spatial axis stays on lanes (lane-dense stores).  weight/bias are (1, C, 1).
# ---------------------------------------------------------------------------
def _ln_cfirst_kernel(x_ref, w_ref, b_ref, o_ref, *, eps):
    x = x_ref[...].astype(jnp.float32)             # (1, C, TL)
    u = jnp.mean(x, axis=1, keepdims=True)         # (1, 1, TL)
    xc = x - u
    s = jnp.mean(xc * xc, axis=1, keepdims=True)   # biased variance
    y = xc * jax.lax.rsqrt(s + eps)
    w = w_ref[...].astype(jnp.float32)             # (1, C, 1)
    b = b_ref[...].astype(jnp.float32)
    o_ref[...] = (y * w + b).astype(o_ref.dtype)


# ---------------------------------------------------------------------------
# channels_last kernel (plain): x tile (TM, C); normalize over trailing C.
# ---------------------------------------------------------------------------
def _ln_clast_kernel(x_ref, w_ref, b_ref, o_ref, *, eps):
    x = x_ref[...].astype(jnp.float32)             # (TM, C)
    u = jnp.mean(x, axis=-1, keepdims=True)
    xc = x - u
    s = jnp.mean(xc * xc, axis=-1, keepdims=True)  # biased variance
    y = xc * jax.lax.rsqrt(s + eps)
    w = w_ref[...].astype(jnp.float32)             # (1, C)
    b = b_ref[...].astype(jnp.float32)
    o_ref[...] = (y * w + b).astype(o_ref.dtype)


# ---------------------------------------------------------------------------
# channels_last kernel (packed, small C): x tile (TM, P) with G positions per
# row (lanes [g*C:(g+1)*C] hold one position's channels).  Segmented mean/var
# via block-diagonal ones matrix on the MXU; output stores are lane-dense.
# ---------------------------------------------------------------------------
def _ln_clast_packed_kernel(x_ref, seg_ref, w_ref, b_ref, o_ref, *, eps, C):
    x = x_ref[...].astype(jnp.float32)             # (TM, P), P % 128 == 0
    seg = seg_ref[...]                             # (P, P) f32 block-diag ones
    inv_c = 1.0 / float(C)
    mean = jnp.dot(x, seg, preferred_element_type=jnp.float32) * inv_c
    xc = x - mean
    var = jnp.dot(xc * xc, seg, preferred_element_type=jnp.float32) * inv_c
    y = xc * jax.lax.rsqrt(var + eps)
    w = w_ref[...].astype(jnp.float32)             # (1, P) = weight tiled G times
    b = b_ref[...].astype(jnp.float32)
    o_ref[...] = (y * w + b).astype(o_ref.dtype)


# ---------------------------------------------------------------------------
# Wrappers.
# ---------------------------------------------------------------------------
def _pick_spatial_tile(L, C, budget):
    """Largest lane tile (multiple of 128, or full L) under the padded-VMEM budget."""
    c_pad = _round_up(C, 8)                        # sublane padding (f32 accounting)
    max_tl = max(128, (budget // (c_pad * 4)) // 128 * 128)
    if L <= max_tl:
        return L                                    # full extent: always legal
    t = max_tl
    while t >= 128:
        if L % t == 0:                              # prefer no tail block
            return t
        t -= 128
    return max_tl


def _layernorm_channels_first(x, weight, bias, eps):
    N, C, H, W = x.shape
    L = H * W
    budget, vmem_cap = _chip_caps()
    x3 = x.reshape(N, C, L)

    TL = _pick_spatial_tile(L, C, budget)
    n_l = pl.cdiv(L, TL)
    # Megacore: guarantee >=2 parallel blocks so both TCs (v7x) get work.
    if N * n_l < 2 and L >= 256:
        TL = max(128, (L // 2) // 128 * 128)
        n_l = pl.cdiv(L, TL)

    w3 = weight.reshape(1, C, 1)
    b3 = bias.reshape(1, C, 1)

    tile_f32 = _round_up(C, 8) * _round_up(TL, 128) * 4
    kernel = functools.partial(_ln_cfirst_kernel, eps=eps)
    out = pl.pallas_call(
        kernel,
        out_shape=jax.ShapeDtypeStruct((N, C, L), x.dtype),
        grid_spec=pltpu.PrefetchScalarGridSpec(
            num_scalar_prefetch=0,
            grid=(N, n_l),
            in_specs=[
                pl.BlockSpec((1, C, TL), lambda n, l: (n, 0, l)),
                pl.BlockSpec((1, C, 1), lambda n, l: (0, 0, 0)),
                pl.BlockSpec((1, C, 1), lambda n, l: (0, 0, 0)),
            ],
            out_specs=pl.BlockSpec((1, C, TL), lambda n, l: (n, 0, l)),
        ),
        compiler_params=pltpu.CompilerParams(
            dimension_semantics=("parallel", "parallel"),
            vmem_limit_bytes=_vmem_limit(tile_f32, vmem_cap)),
    )(x3, w3, b3)
    return out.reshape(N, C, H, W)


def _layernorm_clast_packed(x2, weight, bias, eps, G, P):
    R, C = x2.shape
    Rp = R // G
    budget, vmem_cap = _chip_caps()
    xp = x2.reshape(Rp, P)                          # free row-major reshape

    tm_cap = max(8, (budget // (P * 4)) // 8 * 8)
    TM = Rp if Rp <= tm_cap else tm_cap
    grid_r = pl.cdiv(Rp, TM)
    if grid_r < 2 and Rp >= 16:                     # megacore: >=2 parallel blocks
        TM = max(8, (Rp // 2) // 8 * 8)
        grid_r = pl.cdiv(Rp, TM)

    lane = jnp.arange(P, dtype=jnp.int32)
    seg = (lane[:, None] // C == lane[None, :] // C).astype(jnp.float32)  # (P, P)
    wp = jnp.tile(weight.reshape(1, C), (1, G))     # (1, P): lane j -> weight[j % C]
    bp = jnp.tile(bias.reshape(1, C), (1, G))

    tile_f32 = _round_up(TM, 8) * P * 4
    extra = 2 * P * P * 4                           # resident seg matrix (double-buffered)
    kernel = functools.partial(_ln_clast_packed_kernel, eps=eps, C=C)
    out = pl.pallas_call(
        kernel,
        out_shape=jax.ShapeDtypeStruct((Rp, P), x2.dtype),
        grid_spec=pltpu.PrefetchScalarGridSpec(
            num_scalar_prefetch=0,
            grid=(grid_r,),
            in_specs=[
                pl.BlockSpec((TM, P), lambda i: (i, 0)),
                pl.BlockSpec((P, P), lambda i: (0, 0)),
                pl.BlockSpec((1, P), lambda i: (0, 0)),
                pl.BlockSpec((1, P), lambda i: (0, 0)),
            ],
            out_specs=pl.BlockSpec((TM, P), lambda i: (i, 0)),
        ),
        compiler_params=pltpu.CompilerParams(
            dimension_semantics=("parallel",),
            vmem_limit_bytes=_vmem_limit(tile_f32, vmem_cap, extra=extra)),
    )(xp, seg, wp, bp)
    return out.reshape(R, C)


def _layernorm_channels_last(x, weight, bias, eps):
    C = x.shape[-1]
    x2 = x.reshape(-1, C)
    R = x2.shape[0]

    # Lane-dense packed path for small C (avoids masked vst and 128/C lane waste).
    if C < 128:
        G = math.lcm(C, 128) // C
        P = G * C                                   # multiple of 128
        if P <= 512 and R % G == 0:
            return _layernorm_clast_packed(x2, weight, bias, eps, G, P).reshape(x.shape)

    budget, vmem_cap = _chip_caps()
    c_lanes = _round_up(C, 128)                     # lane padding-aware accounting
    tm_cap = max(8, (budget // (c_lanes * 4)) // 8 * 8)
    TM = R if R <= tm_cap else tm_cap
    grid_r = pl.cdiv(R, TM)
    if grid_r < 2 and R >= 16:                      # megacore: >=2 parallel blocks
        TM = max(8, (R // 2) // 8 * 8)
        grid_r = pl.cdiv(R, TM)

    w2 = weight.reshape(1, C)
    b2 = bias.reshape(1, C)

    tile_f32 = _round_up(TM, 8) * c_lanes * 4
    kernel = functools.partial(_ln_clast_kernel, eps=eps)
    out = pl.pallas_call(
        kernel,
        out_shape=jax.ShapeDtypeStruct((R, C), x.dtype),
        grid_spec=pltpu.PrefetchScalarGridSpec(
            num_scalar_prefetch=0,
            grid=(grid_r,),
            in_specs=[
                pl.BlockSpec((TM, C), lambda i: (i, 0)),
                pl.BlockSpec((1, C), lambda i: (0, 0)),
                pl.BlockSpec((1, C), lambda i: (0, 0)),
            ],
            out_specs=pl.BlockSpec((TM, C), lambda i: (i, 0)),
        ),
        compiler_params=pltpu.CompilerParams(
            dimension_semantics=("parallel",),
            vmem_limit_bytes=_vmem_limit(tile_f32, vmem_cap)),
    )(x2, w2, b2)
    return out.reshape(x.shape)


def layer_norm(x, weight, bias, eps=1e-6, data_format="channels_first"):
    if data_format not in ("channels_last", "channels_first"):
        raise NotImplementedError
    if data_format == "channels_first":
        # x: (N, C, H, W), normalize over C -- native layout, no transposes.
        return _layernorm_channels_first(x, weight, bias, eps)
    else:
        # x: (..., C), normalize over trailing dim (F.layer_norm semantics).
        return _layernorm_channels_last(x, weight, bias, eps)


if __name__ == "__main__":
    eps = 1e-6

    # --- channels_first (module default): NCHW, normalize over C -------------
    key = jax.random.PRNGKey(0)
    N, C, H, W = 2, 4, 16, 16
    x = jax.random.normal(key, (N, C, H, W), dtype=jnp.float32)
    weight = jnp.ones((C,), dtype=jnp.float32)     # init as in the module
    bias = jnp.zeros((C,), dtype=jnp.float32)

    y = layer_norm(x, weight, bias, eps=eps, data_format="channels_first")
    y = jax.block_until_ready(y)

    u = jnp.mean(x, axis=1, keepdims=True)
    s = jnp.mean((x - u) ** 2, axis=1, keepdims=True)
    ref = (x - u) / jnp.sqrt(s + eps)
    ref = weight[None, :, None, None] * ref + bias[None, :, None, None]
    assert y.shape == x.shape and y.dtype == x.dtype
    assert jnp.max(jnp.abs(y - ref)) < 1e-4

    # --- channels_last, small C (packed lane-dense / MXU-segmented path) -----
    k1, k2, k3 = jax.random.split(jax.random.PRNGKey(0), 3)
    Cl = 32
    xl = jax.random.normal(k1, (2, 8, 8, Cl), dtype=jnp.float32)
    wl = jax.random.normal(k2, (Cl,), dtype=jnp.float32)
    bl = jax.random.normal(k3, (Cl,), dtype=jnp.float32)

    yl = layer_norm(xl, wl, bl, eps=eps, data_format="channels_last")
    yl = jax.block_until_ready(yl)

    ul = jnp.mean(xl, axis=-1, keepdims=True)
    sl = jnp.mean((xl - ul) ** 2, axis=-1, keepdims=True)
    refl = wl * ((xl - ul) / jnp.sqrt(sl + eps)) + bl
    assert yl.shape == xl.shape and yl.dtype == xl.dtype
    assert jnp.max(jnp.abs(yl - refl)) < 1e-4

    # --- channels_last, C that does not pack into 128 (plain path) -----------
    k4, k5, k6 = jax.random.split(jax.random.PRNGKey(1), 3)
    Cu = 60
    xu = jax.random.normal(k4, (2, 4, 4, Cu), dtype=jnp.float32)
    wu = jax.random.normal(k5, (Cu,), dtype=jnp.float32)
    bu = jax.random.normal(k6, (Cu,), dtype=jnp.float32)

    yu = layer_norm(xu, wu, bu, eps=eps, data_format="channels_last")
    yu = jax.block_until_ready(yu)

    uu = jnp.mean(xu, axis=-1, keepdims=True)
    su = jnp.mean((xu - uu) ** 2, axis=-1, keepdims=True)
    refu = wu * ((xu - uu) / jnp.sqrt(su + eps)) + bu
    assert yu.shape == xu.shape and yu.dtype == xu.dtype
    assert jnp.max(jnp.abs(yu - refu)) < 1e-4

    print("KERNEL_OK")
</pallas_src>

<mosaic_0001>
module attributes {stable_mosaic.version = 11 : i64} {
  func.func @_ln_cfirst_kernel(%arg0: i32, %arg1: i32, %arg2: memref<1x4x256xf32, #tpu.memory_space<vmem>>, %arg3: memref<1x4x1xf32, #tpu.memory_space<vmem>>, %arg4: memref<1x4x1xf32, #tpu.memory_space<vmem>>, %arg5: memref<1x4x256xf32, #tpu.memory_space<vmem>>) attributes {dimension_semantics = [#tpu.dimension_semantics<parallel>, #tpu.dimension_semantics<parallel>], iteration_bounds = array<i64: 2, 1>, scalar_prefetch = 0 : i64, scratch_operands = 0 : i64, tpu.core_type = #tpu.core_type<tc>, window_params = [{transform_indices = @transform_0, window_bounds = array<i64: 1, 4, 256>}, {pipeline_mode = #tpu.pipeline_mode<synchronous>, transform_indices = @transform_1, window_bounds = array<i64: 1, 4, 1>}, {pipeline_mode = #tpu.pipeline_mode<synchronous>, transform_indices = @transform_2, window_bounds = array<i64: 1, 4, 1>}, {transform_indices = @transform_3, window_bounds = array<i64: 1, 4, 256>}]} {
    %c0 = arith.constant 0 : index
    %c0_0 = arith.constant 0 : index
    %c0_1 = arith.constant 0 : index
    %0 = vector.load %arg2[%c0, %c0_0, %c0_1] : memref<1x4x256xf32, #tpu.memory_space<vmem>>, vector<1x4x256xf32>
    %cst = arith.constant dense<0.000000e+00> : vector<1x256xf32>
    %1 = vector.multi_reduction <add>, %0, %cst [1] : vector<1x4x256xf32> to vector<1x256xf32>
    %2 = vector.shape_cast %1 : vector<1x256xf32> to vector<1x1x256xf32>
    %cst_2 = arith.constant 4.000000e+00 : f32
    %3 = vector.broadcast %cst_2 : f32 to vector<1x1x256xf32>
    %4 = arith.divf %2, %3 : vector<1x1x256xf32>
    %5 = vector.broadcast %4 : vector<1x1x256xf32> to vector<1x4x256xf32>
    %6 = arith.subf %0, %5 : vector<1x4x256xf32>
    %7 = arith.mulf %6, %6 : vector<1x4x256xf32>
    %cst_3 = arith.constant dense<0.000000e+00> : vector<1x256xf32>
    %8 = vector.multi_reduction <add>, %7, %cst_3 [1] : vector<1x4x256xf32> to vector<1x256xf32>
    %9 = vector.shape_cast %8 : vector<1x256xf32> to vector<1x1x256xf32>
    %cst_4 = arith.constant 4.000000e+00 : f32
    %10 = vector.broadcast %cst_4 : f32 to vector<1x1x256xf32>
    %11 = arith.divf %9, %10 : vector<1x1x256xf32>
    %cst_5 = arith.constant 9.99999997E-7 : f32
    %12 = vector.broadcast %cst_5 : f32 to vector<1x1x256xf32>
    %13 = arith.addf %11, %12 : vector<1x1x256xf32>
    %14 = math.rsqrt %13 : vector<1x1x256xf32>
    %15 = vector.broadcast %14 : vector<1x1x256xf32> to vector<1x4x256xf32>
    %16 = arith.mulf %6, %15 : vector<1x4x256xf32>
    %c0_6 = arith.constant 0 : index
    %c0_7 = arith.constant 0 : index
    %c0_8 = arith.constant 0 : index
    %17 = vector.load %arg3[%c0_6, %c0_7, %c0_8] : memref<1x4x1xf32, #tpu.memory_space<vmem>>, vector<1x4x1xf32>
    %c0_9 = arith.constant 0 : index
    %c0_10 = arith.constant 0 : index
    %c0_11 = arith.constant 0 : index
    %18 = vector.load %arg4[%c0_9, %c0_10, %c0_11] : memref<1x4x1xf32, #tpu.memory_space<vmem>>, vector<1x4x1xf32>
    %19 = vector.broadcast %17 : vector<1x4x1xf32> to vector<1x4x256xf32>
    %20 = arith.mulf %16, %19 : vector<1x4x256xf32>
    %21 = vector.broadcast %18 : vector<1x4x1xf32> to vector<1x4x256xf32>
    %22 = arith.addf %20, %21 : vector<1x4x256xf32>
    %c0_12 = arith.constant 0 : index
    %c0_13 = arith.constant 0 : index
    %c0_14 = arith.constant 0 : index
    %23 = vector.load %arg5[%c0_12, %c0_13, %c0_14] : memref<1x4x256xf32, #tpu.memory_space<vmem>>, vector<1x4x256xf32>
    tpu.vector_store %arg5[%c0_12, %c0_13, %c0_14], %22 {strides = array<i32>} : memref<1x4x256xf32, #tpu.memory_space<vmem>>, vector<1x4x256xf32>,
    return
  }
  func.func @transform_0(%arg0: i32, %arg1: i32) -> (i32, i32, i32) {
    %c0_i32 = arith.constant 0 : i32
    %c0_i32_0 = arith.constant 0 : i32
    return %arg0, %c0_i32, %arg1 : i32, i32, i32
  }
  func.func @transform_1(%arg0: i32, %arg1: i32) -> (i32, i32, i32) {
    %c0_i32 = arith.constant 0 : i32
    %c0_i32_0 = arith.constant 0 : i32
    %c0_i32_1 = arith.constant 0 : i32
    %c0_i32_2 = arith.constant 0 : i32
    return %c0_i32, %c0_i32_0, %c0_i32_1 : i32, i32, i32
  }
  func.func @transform_2(%arg0: i32, %arg1: i32) -> (i32, i32, i32) {
    %c0_i32 = arith.constant 0 : i32
    %c0_i32_0 = arith.constant 0 : i32
    %c0_i32_1 = arith.constant 0 : i32
    %c0_i32_2 = arith.constant 0 : i32
    return %c0_i32, %c0_i32_0, %c0_i32_1 : i32, i32, i32
  }
  func.func @transform_3(%arg0: i32, %arg1: i32) -> (i32, i32, i32) {
    %c0_i32 = arith.constant 0 : i32
    %c0_i32_0 = arith.constant 0 : i32
    return %arg0, %c0_i32, %arg1 : i32, i32, i32
  }
}

</mosaic_0001>

<bundles_post_ra>
// kernel: tpu_custom_call.1
= control target key start
LH: loop header
LB: loop body
LE: loop exit
PB: predicated region body
PF: predicated region fallthrough
CT: control target
= control target key end

     0   :  { %8 = vsyncpa [#allocation3], 0  ;;  %s762_s0 = inlined_call_operand.hbm [shape: f32[2,4,256], index: 0, kind: input, shape index: {}]   ;;  %s763_s1 = inlined_call_operand.vmem [shape: f32[1,4,1], index: 1, kind: input, shape index: {}]   ;;  %s764_s2 = inlined_call_operand.vmem [shape: f32[1,4,1], index: 2, kind: input, shape index: {}]   ;;  %s765_s3 = inlined_call_operand.hbm [shape: f32[2,4,256], index: 3, kind: output, shape index: {}]  }
   0x1   :  { %10 = vsyncpa [#allocation3 + $0x1], 0 }
   0x2   :  { %11 = vsyncpa [#allocation4], 0 }
   0x3   :  { %13 = vsyncpa [#allocation4 + $0x1], 0  ;;  %s614_s12 = smov 0   ;;  %s616_s13 = smov 0  }
   0x4   :  { %s618_s14 = smov 0   ;;  %s620_s15 = smov 0  }
   0x5   :  { %s622_s16 = smov 0   ;;  %s624_s17 = smov 0  }
   0x6 LB: > { %s393_s18 = sadd.s32 4294967295, %s588_s17   ;;  %s394_s19 = sadd.s32 4294967294, %s588_s17   ;;  %s588_s17 = sphi %s624_s17, %s19_s17   ;;  %s584_s16 = sphi %s622_s16, %s777_s16   ;;  %s580_s15 = sphi %s620_s15, %s776_s15   ;;  %s576_s14 = sphi %s618_s14, %s775_s14   ;;  %s572_s13 = sphi %s616_s13, %s774_s13   ;;  %s568_s12 = sphi %s614_s12, %s773_s12  }
   0x7   : > { %s31_s20 = sadd.s32 1, %s584_s16  ;;  %s40_s21 = sadd.s32 1, %s576_s14 }
   0x8   : > { %p33_p0 = scmp.ge.s32.totalorder %s31_s20, 2  ;;  %p47_p1 = scmp.ne.s32.totalorder %s576_s14, %s572_s13 }
   0x9   : > { %p48_p2 = scmp.eq.s32.totalorder %s588_s17, 0  ;;  %p53_p3 = scmp.ne.s32.totalorder %s572_s13, %s568_s12 }
   0xa   : > { %s779_s20 = smov (%p33_p0, %s31_s20), 0  ;;  %p54_p5 = scmp.eq.s32.totalorder %s393_s18, 0 }
   0xb   : > { %p655_p4 = por %p48_p2, %p47_p1  ;;  %s35_s23 = ssub.s32 %s584_s16, %s779_s20 }
   0xc   : > { %p121_p6 = scmp.eq.s32.totalorder %s393_s18, 1  ;;  %p38_p7 = scmp.eq.s32.totalorder %s35_s23, 0 }
   0xd   : > { %p661_p8 = por %p54_p5, %p53_p3  ;;  %p127_p10 = scmp.eq.s32.totalorder %s394_s19, 1 }
   0xe   : > { %p665_p9 = por %p121_p6, %p47_p1  ;;  %p422_p13 = scmp.lt.s32.totalorder %s588_s17, 2 }
   0xf   : > { %s670_s26 = scalar_select %p38_p7, %s576_s14, %s40_s21  }
  0x10   : > { %p672_p11 = por %p127_p10, %p53_p3  ;;  %s153_s28 = sand.u32 1, %s576_s14  }
  0x11   : > { %s397_s29 = sshll.u32 %s153_s28, 3  ;;  %s408_s30 = sshll.u32 %s584_s16, 7 }
  0x12   : > { %s769_s27 = scalar_select %p672_p11, 1, 0 }
  0x13   : > { %s165_s6 = scalar_lea.hbm %s762_s0, %s408_s30  ;;  %s157_s7 = scalar_lea.vmem [#allocation2], %s397_s29 }
  0x14   : > { %s167_s8 = sshll.u32 %s157_s7, 4  ;;  %p685_p0 = pnand %p422_p13, %p655_p4  ;;  %s168_s8 = int_to_ptr.vmem [resolvable:$true] %s167_s8 }
  0x15   : > { %p400_p1 = scmp.ge.s32.totalorder %s588_s17, 1  ;;  %p172_p2 = scmp.lt.s32.totalorder %s588_s17, 3 }
  0x16   : > { %s154_s10 = scalar_lea.sflag [#allocation3], %s153_s28  ;;  %p482_p3 = pneg %p685_p0 }
  0x17   : > { %s493_s11 = scalar_lea.vmem %s168_s8, 128  ;;  %s590_s18 = smov [#allocation2]  }
  0x18   : > { %p494_p5 = scmp.ne.s32.totalorder %s168_s8, %s493_s11  ;;  %s498_s19 = sshll.u32 %s590_s18, 4  ;;  %s499_s19 = int_to_ptr.vmem [resolvable:$false] %s498_s19 }
  0x19   : > { %s500_s21 = scalar_lea.vmem %s499_s19, 256  ;;  %p501_p10 = scmp.lt.s32.totalorder %s168_s8, %s499_s19 }
  0x1a   : > { %p496_p6 = pnand %p494_p5, %p482_p3  ;;  %p502_p12 = scmp.lt.s32.totalorder %s500_s21, %s493_s11 }
  0x1c   : > { %p497_p7 = pneg %p496_p6  ;;  %p503_p4 = por %p502_p12, %p501_p10 }
  0x1e   : > { %p504_p13 = pnand %p503_p4, %p497_p7 }
  0x20   : > { %507 = shalt.err (!%p504_p13)
}
  0x21   : > { %417 = dma.hbm_to_vmem [thread:$0]  (!%p685_p0), %s165_s6, 128, %s168_s8, %s154_s10  }
  0x22   : > { %p173_p11 = pnand %p400_p1, %p172_p2 }
  0x23   : > { %s700_s22 = sand.u32 (!%p173_p11), 1, %s572_s13  }
  0x24   : > { %176 = sbr.rel (%p173_p11) target bundleno = 189 (0xbd), region = 32  ;;  %s401_s23 = sshll.u32 (!%p173_p11), %s700_s22, 3 }
  0x25   : > { %s179_s28 = scalar_lea.sflag (!%p173_p11), [#allocation3], %s700_s22  ;;  %s182_s29 = scalar_lea.vmem (!%p173_p11), [#allocation2], %s401_s23 }
  0x29   : > { %559 = dma.done.wait (%p661_p8), %s179_s28, 128  }
  0x2a   : > { %561 = vsyncadd (%p661_p8), %s179_s28, 4294967168  ;;  %v591_v0 = vmov 0   ;;  %v263_v1 = vld [vmem:[%s763_s1] sm:$0xf]  ;;  %vm211_vm0 = vcmask 1043456   ;;  %v272_v45 = vlaneseq  ;;  %s409_s24 = sshll.u32 %s580_s15, 7 }
  0x2b   : > { %474 = vset.pattern.permute.xlu0 %v591_v0  ;;  %v264_v2 = vld [vmem:[%s764_s2] sm:$0xf]  ;;  %v592_v43 = vmov 839922192   ;;  %s204_s7 = scalar_lea.vmem [#allocation5], %s401_s23  ;;  %s307_s11 = scalar_lea.hbm %s765_s3, %s409_s24 }
  0x2c   : > { %267 = vperm.xlu0 %474, %v263_v1   ;;  %v207_v3 = vld [vmem:[%s182_s29] sm:$0xff]  ;;  %v270_v44 = vunpack.c.l.s4 %v592_v43  ;;  %v273_v48 = vshrl.u32 %v272_v45, 7  ;;  %s309_s8 = sshll.u32 %s204_s7, 4  ;;  %s293_s18 = scalar_lea.sflag [#allocation4], %s700_s22  ;;  %s310_s8 = int_to_ptr.vmem [resolvable:$true] %s309_s8 }
  0x2d   : > { %v209_v4 = vcombine.high %v207_v3, %v207_v3  ;;  %v212_v5 = vsel %vm211_vm0, %v207_v3, 0.0  ;;  %s508_s19 = scalar_lea.vmem %s310_s8, 128  ;;  %s593_s21 = smov [#allocation5]  }
  0x2e   : > { %v213_v7 = vrot.slane %v212_v5, 4  ;;  %v271_v47 = vunpack.c.0.s8 %v270_v44  ;;  %p509_p8 = scmp.ne.s32.totalorder %s310_s8, %s508_s19  ;;  %s512_s15 = sshll.u32 %s593_s21, 4  ;;  %s513_s15 = int_to_ptr.vmem [resolvable:$false] %s512_s15 }
  0x2f   : > { %v219_v6 = vsel %vm211_vm0, %v209_v4, 0.0  ;;  %s514_s23 = scalar_lea.vmem %s513_s15, 256  ;;  %p515_p0 = scmp.lt.s32.totalorder %s310_s8, %s513_s15 }
  0x30   : > { %280 = vperm.xlu0 %474, %v264_v2   ;;  %v220_v8 = vrot.slane %v219_v6, 4  ;;  %v214_v9 = vadd.f32 %v213_v7, %v212_v5  ;;  %v274_v50 = vsub.s32 %v271_v47, %v273_v48  ;;  %p510_p11 = pnand %p509_p8, %p665_p9  ;;  %p516_p1 = scmp.lt.s32.totalorder %s514_s23, %s508_s19 }
  0x32   : > { %v221_v10 = vadd.f32 %v220_v8, %v219_v6  ;;  %v215_v11 = vrot.slane %v214_v9, 2  ;;  %p511_p12 = pneg %p510_p11  ;;  %p517_p2 = por %p516_p1, %p515_p0 }
  0x34   : > { %v222_v12 = vrot.slane %v221_v10, 2  ;;  %v216_v13 = vadd.f32 %v215_v11, %v214_v9  ;;  %p518_p3 = pnand %p517_p2, %p511_p12 }
  0x36   : > { %v223_v14 = vadd.f32 %v222_v12, %v221_v10  ;;  %v217_v15 = vrot.slane %v216_v13, 1 }
  0x38   : > { %v224_v16 = vrot.slane %v223_v14, 1  ;;  %v218_v17 = vadd.f32 %v217_v15, %v216_v13 }
  0x3a   : > { %v225_v18 = vadd.f32 %v224_v16, %v223_v14  ;;  %v227_v19 = vmul.f32 0.25, %v218_v17 }
  0x3c   : > { %v228_v20 = vmul.f32 0.25, %v225_v18 }
  0x3e   : > { %v231_v21 = vcombine.low %v227_v19, %v228_v20 }
  0x40   : > { %v233_v22 = vsub.f32 %v207_v3, %v231_v21 }
  0x42   : > { %v234_v23 = vmul.f32 %v233_v22, %v233_v22 }
  0x44   : > { %v236_v24 = vcombine.high %v234_v23, %v234_v23  ;;  %v238_v25 = vsel %vm211_vm0, %v234_v23, 0.0 }
  0x45   : > { %v239_v27 = vrot.slane %v238_v25, 4 }
  0x46   : > { %v245_v26 = vsel %vm211_vm0, %v236_v24, 0.0 }
  0x47   : > { %v246_v28 = vrot.slane %v245_v26, 4  ;;  %v240_v29 = vadd.f32 %v239_v27, %v238_v25 }
  0x49   : > { %v247_v30 = vadd.f32 %v246_v28, %v245_v26  ;;  %v241_v31 = vrot.slane %v240_v29, 2 }
  0x4b   : > { %v248_v32 = vrot.slane %v247_v30, 2  ;;  %v242_v33 = vadd.f32 %v241_v31, %v240_v29 }
  0x4d   : > { %v249_v34 = vadd.f32 %v248_v32, %v247_v30  ;;  %v243_v35 = vrot.slane %v242_v33, 1 }
  0x4f   : > { %v250_v36 = vrot.slane %v249_v34, 1  ;;  %v244_v37 = vadd.f32 %v243_v35, %v242_v33 }
  0x51   : > { %v251_v38 = vadd.f32 %v250_v36, %v249_v34  ;;  %v252_v39 = vmul.f32 0.25, %v244_v37 }
  0x53   : > { %v253_v40 = vmul.f32 0.25, %v251_v38  ;;  %v254_v41 = vadd.f32 1e-06, %v252_v39 }
  0x55   : > { %v255_v42 = vadd.f32 1e-06, %v253_v40  ;;  %476 = vrsqrt.f32 %v254_v41 }
  0x57   : > { %478 = vrsqrt.f32 %v255_v42 }
  0x62   : > { %v477_v46 = vpop.eup %476 }
  0x64   : > { %v479_v49 = vpop.eup %478 }
  0x65   : > { %v260_v51 = vcombine.low %v477_v46, %v479_v49 }
  0x67   : > { %v262_v53 = vmul.f32 %v260_v51, %v233_v22 }
  0xa7   : > { %v268_v52 = vpop.permute.xlu0 %267 }
  0xa8   : > { %v275_v54 = vrot.slane %v268_v52, %v274_v50 }
  0xaa   : > { %v277_v56 = vmul.f32 %v275_v54, %v262_v53 }
  0xab   : > { %v281_v55 = vpop.permute.xlu0 %280 }
  0xac   : > { %v288_v57 = vrot.slane %v281_v55, %v274_v50 }
  0xae   : > { %v290_v58 = vadd.f32 %v288_v57, %v277_v56 }
  0xb0   : > { %291 = vst [vmem:[%s204_s7] sm:$0xff] %v290_v58 }
  0xb1   : > { %521 = shalt.err (!%p518_p3)
}
  0xb2   : > { %s522_s28 = scalar_lea.hbm %s307_s11, 128  ;;  %s526_s30 = scalar_lea.hbm %s765_s3, 256 }
  0xb3   : > { %p523_p5 = scmp.ne.s32.totalorder %s307_s11, %s522_s28  ;;  %p527_p10 = scmp.lt.s32.totalorder %s307_s11, %s765_s3 }
  0xb4   : > { %p528_p4 = scmp.lt.s32.totalorder %s526_s30, %s522_s28 }
  0xb5   : > { %p524_p6 = pnand %p523_p5, %p665_p9 }
  0xb6   : > { %p529_p13 = por %p528_p4, %p527_p10 }
  0xb7   : > { %p525_p7 = pneg %p524_p6 }
  0xb9   : > { %p530_p8 = pnand %p529_p13, %p525_p7 }
  0xbb   : > { %533 = shalt.err (!%p530_p8)
}
  0xbc   : > { %412 = dma.vmem_to_hbm [thread:$0]  (%p665_p9), %s310_s8, 128, %s307_s11, %s293_s18  }
  0xbd PF: > { %s321_s6 = sand.u32 1, %s568_s12   ;;  %p771_p11 = scmp.ne.s32.totalorder %s769_s27, 0 }
  0xbe   : > { %p772_p12 = scmp.ge.s32.totalorder %s588_s17, 2  ;;  %s322_s24 = scalar_lea.sflag [#allocation4], %s321_s6 }
  0xc0   : > { %p419_p0 = pnand %p772_p12, %p771_p11 }
  0xc2   : > { %p420_p1 = pneg %p419_p0 }
  0xc4   : > { %563 = dma.done.wait (%p420_p1), %s322_s24, 128  }
  0xc5   : > { %565 = vsyncadd (%p420_p1), %s322_s24, 4294967168  ;;  %s19_s17 = sadd.s32 1, %s588_s17   ;;  %s773_s12 = smov %s572_s13 }
  0xc6   : > { %p16_p2 = scmp.ge.s32.totalorder %s19_s17, 4   ;;  %s774_s13 = smov %s576_s14 }
  0xc7   : > { %s775_s14 = smov %s670_s26  ;;  %s776_s15 = smov %s584_s16 }
  0xc8   : > { %s777_s16 = smov %s779_s20  ;;  %18 = sbr.rel (!%p16_p2) target bundleno = 6 (0x6), region = 77 }
  0xcd   :  { %327 = vsyncpa [#allocation3], 1 }
  0xce   :  { %329 = vsyncpa [#allocation3 + $0x1], 1 }
  0xcf   :  { %330 = vsyncpa [#allocation4], 1 }
  0xd0   :  { %332 = vsyncpa [#allocation4 + $0x1], 1 }

</bundles_post_ra>
